<compile_context>
chip_gen: v7x
topology: tpu7x:2x2x1
jax: 0.10.0
libtpu: 0.0.40
codegen_flags: <defaults>
</compile_context>

<pallas_src>
import functools

import jax
import jax.numpy as jnp
from jax import lax
from jax.experimental import pallas as pl
from jax.experimental.pallas import tpu as pltpu


# ---------------------------------------------------------------------------
# Budgets (generation dependent)
# ---------------------------------------------------------------------------

def _vmem_capacity_bytes():
    try:
        return int(pltpu.get_tpu_info().vmem_capacity_bytes)
    except Exception:
        return 64 * 1024 * 1024            # conservative (v7x-sized)


def _budgets():
    cap = _vmem_capacity_bytes()
    if cap >= 100 * 1024 * 1024:           # v5e / v6e : 128 MiB physical VMEM
        return 64 * 1024 * 1024, 6 * 1024 * 1024
    return 32 * 1024 * 1024, 4 * 1024 * 1024   # v7x : 64 MiB physical VMEM


def _pick_s_tile(S_pad, C, itemsize, target_block_bytes):
    """Largest multiple of 128 dividing S_pad with a (C, s_tile) block within
    the per-block budget (min 128; S_pad is always a multiple of 128)."""
    best = 128
    t = 128
    while t <= S_pad:
        if S_pad % t == 0 and C * t * itemsize <= target_block_bytes:
            best = t
        t += 128
    return best


def _pick_c_chunk(C):
    """Channel-chunk for the running max/min reduction (caps live vregs)."""
    if C <= 128:
        return C
    for cand in (128, 64, 32, 16, 8):
        if C % cand == 0:
            return cand
    return C


# ---------------------------------------------------------------------------
# Kernels
# ---------------------------------------------------------------------------

def _channel_sum_kernel(x_ref, sums_ref, *, lane_groups):
    """Phase 1: accumulate per-(n, c) lane-partial sums over the spatial axis.

    Only VPU adds in the hot loop; the final 128-lane reduce happens once, in
    XLA, on the tiny (N, n_split, C, 128) output.

    x_ref:    (1, C, s_tile)     input tile, native dtype
    sums_ref: (1, 1, C, 128)     float32 lane-partial accumulator (resident
                                 across the inner S grid axis)
    """
    @pl.when(pl.program_id(2) == 0)
    def _init():
        sums_ref[...] = jnp.zeros_like(sums_ref)

    acc = x_ref[:, :, 0:128].astype(jnp.float32)
    for j in range(1, lane_groups):
        acc = acc + x_ref[:, :, j * 128:(j + 1) * 128].astype(jnp.float32)
    sums_ref[...] += acc[:, None, :, :]


def _channel_scale_pool_kernel(x_ref, ca_ref, pooled_ref, *, c_chunk):
    """Phase 2: x_ca = x * ca (f32), running per-position max/min over channel
    chunks; single lane-dense f32 store of the pooled map.

    x_ref:      (1, C, s_tile)   native dtype
    ca_ref:     (1, C, 1)        float32 channel attention
    pooled_ref: (1, 2, s_tile)   float32; row 0 = max_C(x*ca), row 1 = min_C(x*ca)
    """
    C = x_ref.shape[1]
    n_chunks = C // c_chunk

    def chunk(i):
        xc = x_ref[:, i * c_chunk:(i + 1) * c_chunk, :].astype(jnp.float32)
        cac = ca_ref[:, i * c_chunk:(i + 1) * c_chunk, :]
        return xc * cac

    xca0 = chunk(0)
    mx = jnp.max(xca0, axis=1, keepdims=True)
    mn = jnp.min(xca0, axis=1, keepdims=True)
    for i in range(1, n_chunks):
        xcai = chunk(i)
        mx = jnp.maximum(mx, jnp.max(xcai, axis=1, keepdims=True))
        mn = jnp.minimum(mn, jnp.min(xcai, axis=1, keepdims=True))
    pooled_ref[...] = jnp.concatenate([mx, mn], axis=1)


def _spatial_conv_kernel(xpad_ref, w_ref, sa_ref, *, H, W, K):
    """7x7x7 Conv3d (2 -> 1 channels), 'same' padding, as shift-and-accumulate.

    xpad_ref: (1, 2, D+2P, H+2P, W+2P) f32 zero-padded pooled map (whole volume
              per batch n, resident across the D grid axis)
    w_ref:    (2*K*K*K + 1,)            f32 flattened weights + bias in SMEM
    sa_ref:   (1, 1, H, W)              f32 output logits plane at depth
                                        d = program_id(1)
    """
    d = pl.program_id(1)
    acc = jnp.zeros((H, W), dtype=jnp.float32)
    for c in range(2):
        for kd in range(K):
            plane = xpad_ref[0, c, pl.ds(d + kd, 1)][0]        # (H+2P, W+2P)
            for kh in range(K):
                rows = plane[kh:kh + H, :]                     # (H, W+2P)
                for kw in range(K):
                    wgt = w_ref[((c * K + kd) * K + kh) * K + kw]
                    acc = acc + rows[:, kw:kw + W] * wgt
    sa_ref[0, 0, :, :] = acc + w_ref[2 * K * K * K]            # + bias


def _final_scale_kernel(x_ref, ca_ref, sa_ref, o_ref):
    """Phase 3: out = x * (x * ca) * sigmoid(sa_logits), computed in f32
    per-vreg and cast once at the store.

    x_ref:  (1, C, s_tile)   native dtype
    ca_ref: (1, C, 1)        float32 channel attention (lane broadcast)
    sa_ref: (1, 1, s_tile)   float32 spatial-attention logits (sublane broadcast)
    o_ref:  (1, C, s_tile)   native dtype
    """
    x32 = x_ref[...].astype(jnp.float32)
    sa = jax.nn.sigmoid(sa_ref[...])            # tiny (1,1,s_tile) row, EUP
    o_ref[...] = (x32 * (x32 * ca_ref[...]) * sa).astype(o_ref.dtype)


# ---------------------------------------------------------------------------
# Wrapper
# ---------------------------------------------------------------------------

def cbam_forward(x, w_fc1, w_fc2, w_sa, b_sa, *, s_tile=None, donate_x=False):
    """CBAM forward.

    x:     (N, C, D, H, W)
    w_fc1: (C//r, C, 1, 1, 1)   ChannelAttention.fc1 (Conv3d 1x1x1, no bias)
    w_fc2: (C, C//r, 1, 1, 1)   ChannelAttention.fc2 (Conv3d 1x1x1, no bias)
    w_sa:  (1, 2, 7, 7, 7)      SpatialAttention.conv weight
    b_sa:  (1,)                 SpatialAttention.conv bias
    donate_x: alias x's HBM buffer to the output of the final pass.
    Returns NCDHW tensor, same shape/dtype as x.
    """
    N, C, D, H, W = x.shape
    Cr = w_fc1.shape[0]
    K = w_sa.shape[-1]
    P = K // 2
    S = D * H * W

    vmem_limit, target_block = _budgets()

    # Free reshape to (N, C, S): C on sublanes, S on lanes (no HBM transpose).
    # Pad S to a multiple of 128 so every streaming pass stays lane-tiled.
    x_ncs = x.reshape(N, C, S)
    S_pad = ((S + 127) // 128) * 128
    if S_pad != S:
        # TODO(synk): the zero-pad costs one extra copy of x; an in-kernel
        # masked tail would avoid it (typical D/H/W give S % 128 == 0).
        x_ncs = jnp.pad(x_ncs, ((0, 0), (0, 0), (0, S_pad - S)))

    if s_tile is None:
        s_tile = _pick_s_tile(S_pad, C, x.dtype.itemsize, target_block)
    assert S_pad % s_tile == 0 and s_tile % 128 == 0
    n_s = S_pad // s_tile
    lane_groups = s_tile // 128

    # ---- Phase 1: per-(n, c) spatial sum (lane-partial accumulator) --------
    # Extra "parallel" split of S so both v7x TensorCores work at small N.
    n_split = 2 if (n_s % 2 == 0 and n_s >= 2) else 1
    n_s_inner = n_s // n_split
    part_sums = pl.pallas_call(
        functools.partial(_channel_sum_kernel, lane_groups=lane_groups),
        out_shape=jax.ShapeDtypeStruct((N, n_split, C, 128), jnp.float32),
        grid=(N, n_split, n_s_inner),
        in_specs=[pl.BlockSpec((1, C, s_tile),
                               lambda n, p, s: (n, 0, p * n_s_inner + s))],
        out_specs=pl.BlockSpec((1, 1, C, 128), lambda n, p, s: (n, p, 0, 0)),
        compiler_params=pltpu.CompilerParams(
            dimension_semantics=("parallel", "parallel", "arbitrary"),
            vmem_limit_bytes=vmem_limit),
    )(x_ncs)

    avg = jnp.sum(part_sums, axis=(1, 3)) * (1.0 / S)              # (N, C) f32

    # ---- Channel-attention MLP, batched over N (O(N*C*Cr) — plain XLA) -----
    w1t = w_fc1.reshape(Cr, C).astype(jnp.float32).T               # (C, Cr)
    w2t = w_fc2.reshape(C, Cr).astype(jnp.float32).T               # (Cr, C)
    h = jnp.maximum(avg @ w1t, 0.0)                                # (N, Cr)
    ca = jax.nn.sigmoid(h @ w2t)[:, :, None]                       # (N, C, 1) f32

    # ---- Phase 2: channel scale + chunked max/min pooling (streaming) ------
    c_chunk = _pick_c_chunk(C)
    pooled = pl.pallas_call(
        functools.partial(_channel_scale_pool_kernel, c_chunk=c_chunk),
        out_shape=jax.ShapeDtypeStruct((N, 2, S_pad), jnp.float32),
        grid=(N, n_s),
        in_specs=[
            pl.BlockSpec((1, C, s_tile), lambda n, s: (n, 0, s)),
            pl.BlockSpec((1, C, 1), lambda n, s: (n, 0, 0)),
        ],
        out_specs=pl.BlockSpec((1, 2, s_tile), lambda n, s: (n, 0, s)),
        compiler_params=pltpu.CompilerParams(
            dimension_semantics=("parallel", "parallel"),
            vmem_limit_bytes=vmem_limit),
    )(x_ncs, ca)

    # ---- Spatial-attention 7x7x7 Conv3d (2 -> 1 ch) as a Pallas kernel -----
    pooled_v = pooled[:, :, :S].reshape(N, 2, D, H, W)
    pooled_pad = jnp.pad(pooled_v, ((0, 0), (0, 0), (P, P), (P, P), (P, P)))
    w_flat = jnp.concatenate([w_sa.reshape(-1).astype(jnp.float32),
                              b_sa.reshape(-1).astype(jnp.float32)])  # (2*K^3+1,)

    # TODO(synk): for very large H*W the whole-volume VMEM block should become a
    # depth-sliced halo tile; for typical CBAM feature maps it fits comfortably.
    sa_logits = pl.pallas_call(
        functools.partial(_spatial_conv_kernel, H=H, W=W, K=K),
        out_shape=jax.ShapeDtypeStruct((N, D, H, W), jnp.float32),
        grid=(N, D),
        in_specs=[
            pl.BlockSpec((1, 2, D + 2 * P, H + 2 * P, W + 2 * P),
                         lambda n, d: (n, 0, 0, 0, 0)),
            pl.BlockSpec(memory_space=pltpu.MemorySpace.SMEM),
        ],
        out_specs=pl.BlockSpec((1, 1, H, W), lambda n, d: (n, d, 0, 0)),
        compiler_params=pltpu.CompilerParams(
            dimension_semantics=("parallel", "parallel"),
            vmem_limit_bytes=vmem_limit),
    )(pooled_pad, w_flat)

    sa_flat = sa_logits.reshape(N, 1, S)
    if S_pad != S:
        sa_flat = jnp.pad(sa_flat, ((0, 0), (0, 0), (0, S_pad - S)))

    # ---- Phase 3: out = x * (x * ca) * sigmoid(sa)  (streaming, f32 math) ---
    out_ncs = pl.pallas_call(
        _final_scale_kernel,
        out_shape=jax.ShapeDtypeStruct((N, C, S_pad), x.dtype),
        grid=(N, n_s),
        in_specs=[
            pl.BlockSpec((1, C, s_tile), lambda n, s: (n, 0, s)),
            pl.BlockSpec((1, C, 1), lambda n, s: (n, 0, 0)),
            pl.BlockSpec((1, 1, s_tile), lambda n, s: (n, 0, s)),
        ],
        out_specs=pl.BlockSpec((1, C, s_tile), lambda n, s: (n, 0, s)),
        input_output_aliases=({0: 0} if donate_x else {}),
        compiler_params=pltpu.CompilerParams(
            dimension_semantics=("parallel", "parallel"),
            vmem_limit_bytes=vmem_limit),
    )(x_ncs, ca, sa_flat)

    if S_pad != S:
        out_ncs = out_ncs[:, :, :S]
    return out_ncs.reshape(N, C, D, H, W)


# ---------------------------------------------------------------------------
# Pure-JAX reference with identical semantics to the PyTorch CBAM module
# ---------------------------------------------------------------------------

def _reference(x, w_fc1, w_fc2, w_sa, b_sa):
    N, C, D, H, W = x.shape
    Cr = w_fc1.shape[0]
    # ChannelAttention
    avg = jnp.mean(x, axis=(2, 3, 4))                                  # (N, C)
    h = jnp.maximum(avg @ w_fc1.reshape(Cr, C).T, 0.0)                 # (N, Cr)
    ca = jax.nn.sigmoid(h @ w_fc2.reshape(C, Cr).T)[:, :, None, None, None]
    x_ca = x * ca
    # SpatialAttention (max over C, min over C, 7x7x7 conv w/ bias, sigmoid)
    mx = jnp.max(x_ca, axis=1, keepdims=True)
    mn = jnp.min(x_ca, axis=1, keepdims=True)
    concat = jnp.concatenate([mx, mn], axis=1)                         # (N, 2, D, H, W)
    sa = jax.nn.sigmoid(
        lax.conv_general_dilated(
            concat, w_sa, window_strides=(1, 1, 1),
            padding=((3, 3), (3, 3), (3, 3)),
            dimension_numbers=("NCDHW", "OIDHW", "NCDHW"))
        + b_sa.reshape(1, 1, 1, 1, 1))
    # CBAM: x * spatial_attention(channel_attention(x))
    return x * (x_ca * sa)


if __name__ == "__main__":
    # Small deterministic example consistent with the module
    # (Conv3d => 5D input; reduction_ratio=16 => C multiple of 16).
    N, C, D, H, W = 2, 64, 4, 8, 8        # S = 256 -> two 128-wide lane tiles
    reduction_ratio = 16
    Cr = C // reduction_ratio

    key = jax.random.PRNGKey(0)
    kx, k1, k2, k3, k4 = jax.random.split(key, 5)
    x = jax.random.normal(kx, (N, C, D, H, W), dtype=jnp.float32)
    # Synthetic weights matching the PyTorch parameter shapes.
    w_fc1 = jax.random.normal(k1, (Cr, C, 1, 1, 1), dtype=jnp.float32) * 0.1
    w_fc2 = jax.random.normal(k2, (C, Cr, 1, 1, 1), dtype=jnp.float32) * 0.1
    w_sa = jax.random.normal(k3, (1, 2, 7, 7, 7), dtype=jnp.float32) * 0.05
    b_sa = jax.random.normal(k4, (1,), dtype=jnp.float32) * 0.05

    # s_tile=128 so the demo exercises the tiled reduction / streaming grids
    # (including the split-S phase-1 accumulator path).
    out = jax.block_until_ready(
        cbam_forward(x, w_fc1, w_fc2, w_sa, b_sa, s_tile=128))
    ref = jax.block_until_ready(_reference(x, w_fc1, w_fc2, w_sa, b_sa))

    assert out.shape == x.shape and out.dtype == x.dtype
    assert jnp.allclose(out, ref, atol=1e-4, rtol=1e-4), "Pallas CBAM mismatch vs reference"
    print("KERNEL_OK")
</pallas_src>

<mosaic_0001>
module attributes {stable_mosaic.version = 11 : i64} {
  func.func @_channel_sum_kernel(%arg0: i32, %arg1: i32, %arg2: i32, %arg3: memref<1x64x128xf32, #tpu.memory_space<vmem>>, %arg4: memref<1x1x64x128xf32, #tpu.memory_space<vmem>>) attributes {dimension_semantics = [#tpu.dimension_semantics<parallel>, #tpu.dimension_semantics<parallel>, #tpu.dimension_semantics<arbitrary>], iteration_bounds = array<i64: 2, 2, 1>, scalar_prefetch = 0 : i64, scratch_operands = 0 : i64, tpu.core_type = #tpu.core_type<tc>, window_params = [{transform_indices = @transform_0, window_bounds = array<i64: 1, 64, 128>}, {transform_indices = @transform_1, window_bounds = array<i64: 1, 1, 64, 128>}]} {
    %c0_i32 = arith.constant 0 : i32
    %0 = arith.cmpi eq, %arg2, %c0_i32 : i32
    %1 = arith.extui %0 : i1 to i32
    %c0_i32_0 = arith.constant 0 : i32
    %2 = arith.cmpi ne, %1, %c0_i32_0 : i32
    scf.if %2 {
      %cst = arith.constant 0.000000e+00 : f32
      %8 = vector.broadcast %cst : f32 to vector<1x1x64x128xf32>
      %c0_11 = arith.constant 0 : index
      %c0_12 = arith.constant 0 : index
      %c0_13 = arith.constant 0 : index
      %c0_14 = arith.constant 0 : index
      %9 = vector.load %arg4[%c0_11, %c0_12, %c0_13, %c0_14] : memref<1x1x64x128xf32, #tpu.memory_space<vmem>>, vector<1x1x64x128xf32>
      tpu.vector_store %arg4[%c0_11, %c0_12, %c0_13, %c0_14], %8 {strides = array<i32>} : memref<1x1x64x128xf32, #tpu.memory_space<vmem>>, vector<1x1x64x128xf32>,
    } else {
    }
    %c0 = arith.constant 0 : index
    %c0_1 = arith.constant 0 : index
    %c0_2 = arith.constant 0 : index
    %3 = vector.load %arg3[%c0, %c0_1, %c0_2] : memref<1x64x128xf32, #tpu.memory_space<vmem>>, vector<1x64x128xf32>
    %c0_3 = arith.constant 0 : index
    %c0_4 = arith.constant 0 : index
    %c0_5 = arith.constant 0 : index
    %c0_6 = arith.constant 0 : index
    %4 = vector.load %arg4[%c0_3, %c0_4, %c0_5, %c0_6] : memref<1x1x64x128xf32, #tpu.memory_space<vmem>>, vector<1x1x64x128xf32>
    %5 = vector.shape_cast %3 : vector<1x64x128xf32> to vector<1x1x64x128xf32>
    %6 = arith.addf %4, %5 : vector<1x1x64x128xf32>
    %c0_7 = arith.constant 0 : index
    %c0_8 = arith.constant 0 : index
    %c0_9 = arith.constant 0 : index
    %c0_10 = arith.constant 0 : index
    %7 = vector.load %arg4[%c0_7, %c0_8, %c0_9, %c0_10] : memref<1x1x64x128xf32, #tpu.memory_space<vmem>>, vector<1x1x64x128xf32>
    tpu.vector_store %arg4[%c0_7, %c0_8, %c0_9, %c0_10], %6 {strides = array<i32>} : memref<1x1x64x128xf32, #tpu.memory_space<vmem>>, vector<1x1x64x128xf32>,
    return
  }
  func.func @transform_0(%arg0: i32, %arg1: i32, %arg2: i32) -> (i32, i32, i32) {
    %c1_i32 = arith.constant 1 : i32
    %0 = arith.muli %arg1, %c1_i32 : i32
    %1 = arith.addi %0, %arg2 : i32
    %c0_i32 = arith.constant 0 : i32
    %c0_i32_0 = arith.constant 0 : i32
    return %arg0, %c0_i32, %1 : i32, i32, i32
  }
  func.func @transform_1(%arg0: i32, %arg1: i32, %arg2: i32) -> (i32, i32, i32, i32) {
    %c0_i32 = arith.constant 0 : i32
    %c0_i32_0 = arith.constant 0 : i32
    %c0_i32_1 = arith.constant 0 : i32
    return %arg0, %arg1, %c0_i32, %c0_i32_0 : i32, i32, i32, i32
  }
}

</mosaic_0001>

<bundles_post_ra>
// kernel: tpu_custom_call.1
= control target key start
LH: loop header
LB: loop body
LE: loop exit
PB: predicated region body
PF: predicated region fallthrough
CT: control target
= control target key end

     0   :  { %6 = vsyncpa [#allocation3], 0  ;;  %s758_s0 = inlined_call_operand.hbm [shape: f32[2,64,256], index: 0, kind: input, shape index: {}]   ;;  %s759_s1 = inlined_call_operand.hbm [shape: f32[2,2,64,128], index: 1, kind: output, shape index: {}]  }
   0x1   :  { %8 = vsyncpa [#allocation3 + $0x1], 0 }
   0x2   :  { %9 = vsyncpa [#allocation4], 0 }
   0x3   :  { %11 = vsyncpa [#allocation4 + $0x1], 0  ;;  %s563_s6 = smov 0   ;;  %s565_s7 = smov 0  }
   0x4   :  { %s567_s8 = smov 0   ;;  %s569_s9 = smov 0  }
   0x5   :  { %s571_s10 = smov 0   ;;  %s573_s11 = smov 0  }
   0x6   :  { %s575_s12 = smov 0   ;;  %s577_s13 = smov 0  }
   0x7 LB: > { %s316_s14 = sadd.s32 4294967295, %s544_s13   ;;  %s317_s15 = sadd.s32 4294967294, %s544_s13   ;;  %s544_s13 = sphi %s577_s13, %s17_s13   ;;  %s540_s12 = sphi %s575_s12, %s774_s12   ;;  %s536_s11 = sphi %s573_s11, %s773_s11   ;;  %s532_s10 = sphi %s571_s10, %s772_s10   ;;  %s528_s9 = sphi %s569_s9, %s771_s9   ;;  %s524_s8 = sphi %s567_s8, %s770_s8   ;;  %s520_s7 = sphi %s565_s7, %s769_s7   ;;  %s516_s6 = sphi %s563_s6, %s768_s6  }
   0x8   : > { %s32_s16 = sadd.s32 1, %s536_s11  ;;  %s36_s17 = sadd.s32 1, %s540_s12 }
   0x9   : > { %p34_p0 = scmp.ge.s32.totalorder %s32_s16, 2  ;;  %s47_s18 = sadd.s32 1, %s524_s8 }
   0xa   : > { %p54_p1 = scmp.ne.s32.totalorder %s524_s8, %s520_s7  ;;  %p55_p2 = scmp.eq.s32.totalorder %s544_s13, 0 }
   0xb   : > { %s776_s16 = smov (%p34_p0, %s32_s16), 0  ;;  %s778_s17 = smov (!%p34_p0, %s36_s17), %s540_s12 }
   0xc   : > { %s43_s19 = ssub.s32 %s536_s11, %s776_s16  ;;  %p616_p3 = por %p55_p2, %p54_p1 }
   0xd   : > { %p38_p4 = scmp.ge.s32.totalorder %s778_s17, 2  ;;  %p60_p5 = scmp.ne.s32.totalorder %s520_s7, %s516_s6 }
   0xe   : > { %p61_p6 = scmp.eq.s32.totalorder %s316_s14, 0  ;;  %p86_p7 = scmp.eq.s32.totalorder %s316_s14, 3 }
   0xf   : > { %s780_s17 = smov (%p38_p4, %s778_s17), 0  ;;  %p92_p10 = scmp.eq.s32.totalorder %s317_s15, 3 }
  0x10   : > { %p624_p8 = por %p61_p6, %p60_p5  ;;  %p628_p9 = por %p86_p7, %p54_p1 }
  0x11   : > { %s42_s23 = ssub.s32 %s540_s12, %s780_s17  ;;  %p634_p12 = por %p92_p10, %p60_p5 }
  0x12   : > { %s763_s22 = scalar_select %p628_p9, 1, 0 }
  0x13   : > { %s44_s24 = sor.u32 %s43_s19, %s42_s23  ;;  %p344_p13 = scmp.lt.s32.totalorder %s544_s13, 4 }
  0x14   : > { %p45_p11 = scmp.eq.s32.totalorder %s44_s24, 0  ;;  %s112_s26 = sand.u32 1, %s524_s8  }
  0x15   : > { %s764_s25 = scalar_select %p634_p12, 1, 0 }
  0x16   : > { %s641_s27 = scalar_select %p45_p11, %s524_s8, %s47_s18  }
  0x17   : > { %s320_s28 = sshll.u32 %s112_s26, 6  ;;  %s321_s29 = sshll.u32 %s540_s12, 4 }
  0x18   : > { %s122_s30 = sadd.s32 %s536_s11, %s321_s29  ;;  %s116_s2 = scalar_lea.vmem [#allocation2], %s320_s28 }
  0x19   : > { %s125_s3 = sshll.u32 %s116_s2, 4  ;;  %s322_s4 = sshll.u32 %s122_s30, 7  ;;  %s645_s3 = int_to_ptr.vmem [resolvable:$true] %s125_s3 }
  0x1a   : > { %s650_s15 = scalar_lea.hbm %s758_s0, %s322_s4  ;;  %p654_p0 = pnand %p344_p13, %p616_p3 }
  0x1b   : > { %s658_s19 = scalar_lea.sflag [#allocation3], %s112_s26  ;;  %s416_s23 = scalar_lea.hbm %s650_s15, 1024 }
  0x1c   : > { %p417_p1 = scmp.ne.s32.totalorder %s650_s15, %s416_s23  ;;  %p418_p2 = pneg %p654_p0 }
  0x1d   : > { %s421_s28 = scalar_lea.hbm %s758_s0, 4096  ;;  %p422_p3 = scmp.lt.u32.totalorder %s650_s15, %s758_s0 }
  0x1e   : > { %p419_p4 = pnand %p418_p2, %p417_p1  ;;  %p423_p6 = scmp.lt.u32.totalorder %s421_s28, %s416_s23 }
  0x1f   : > { %p425_p10 = scmp.lt.u32.totalorder %s416_s23, %s650_s15 }
  0x20   : > { %p420_p5 = pneg %p419_p4  ;;  %p424_p7 = por %p423_p6, %p422_p3 }
  0x22   : > { %p426_p11 = por %p425_p10, %p424_p7 }
  0x24   : > { %p427_p13 = pnand %p426_p11, %p420_p5 }
  0x26   : > { %430 = shalt.err (!%p427_p13)
}
  0x27   : > { %s431_s26 = scalar_lea.vmem %s645_s3, 1024  ;;  %s546_s2 = smov [#allocation2]  }
  0x28   : > { %p432_p1 = scmp.ne.s32.totalorder %s645_s3, %s431_s26  ;;  %s436_s4 = sshll.u32 %s546_s2, 4  ;;  %s437_s4 = int_to_ptr.vmem [resolvable:$false] %s436_s4 }
  0x29   : > { %s438_s5 = scalar_lea.vmem %s437_s4, 2048  ;;  %p439_p9 = scmp.lt.s32.totalorder %s645_s3, %s437_s4 }
  0x2a   : > { %p434_p4 = pnand %p432_p1, %p418_p2  ;;  %p440_p3 = scmp.lt.s32.totalorder %s438_s5, %s431_s26 }
  0x2c   : > { %p435_p12 = pneg %p434_p4  ;;  %p441_p6 = por %p440_p3, %p439_p9 }
  0x2e   : > { %p442_p7 = pnand %p441_p6, %p435_p12 }
  0x30   : > { %445 = shalt.err (!%p442_p7)
}
  0x31   : > { %s547_s14 = smov 256   ;;  %s548_s23 = smov 128  }
  0x32   : > { %s549_s20 = smov 8   ;;  %p323_p2 = scmp.ge.s32.totalorder %s544_s13, 1 }
  0x33   : > { %339 = dma.hbm_to_vmem [thread:$0]  (!%p654_p0), %s650_s15, 1024, %s645_s3, %s658_s19, %s547_s14, %s548_s23, %s549_s20  }
  0x34   : > { %p133_p5 = scmp.lt.s32.totalorder %s544_s13, 5 }
  0x36   : > { %p134_p10 = pnand %p323_p2, %p133_p5 }
  0x37   : > { %s689_s24 = sand.u32 (!%p134_p10), 1, %s520_s7  }
  0x38   : > { %137 = sbr.rel (%p134_p10) target bundleno = 92 (0x5c), region = 24  ;;  %s324_s28 = sshll.u32 (!%p134_p10), %s689_s24, 6 }
  0x39   : > { %s140_s29 = scalar_lea.sflag (!%p134_p10), [#allocation3], %s689_s24  ;;  %s143_s30 = scalar_lea.vmem (!%p134_p10), [#allocation2], %s324_s28 }
  0x3f   : > { %507 = dma.done.wait (%p624_p8), %s140_s29, 1024  }
  0x40   : > { %509 = vsyncadd (%p624_p8), %s140_s29, 4294966272  ;;  %s327_s3 = sshll.u32 %s528_s9, 3  ;;  %s328_s15 = sshll.u32 %s532_s10, 4  ;;  %v175_v0 = vld [vmem:[%s143_s30] sm:$0xff]  ;;  %v176_v1 = vld [vmem:[%s143_s30 + $0x8] sm:$0xff] }
  0x41   : > { %s220_s18 = sadd.s32 %s328_s15, %s327_s3  ;;  %s161_s26 = scalar_lea.vmem [#allocation5], %s324_s28  ;;  %v177_v2 = vld [vmem:[%s143_s30 + $0x10] sm:$0xff]  ;;  %v178_v3 = vld [vmem:[%s143_s30 + $0x18] sm:$0xff]  ;;  %v179_v4 = vld [vmem:[%s143_s30 + $0x20] sm:$0xff] }
  0x42   : > { %s329_s19 = sshll.u32 %s220_s18, 7  ;;  %s223_s2 = sshll.u32 %s161_s26, 4  ;;  %v180_v5 = vld [vmem:[%s143_s30 + $0x28] sm:$0xff]  ;;  %v181_v6 = vld [vmem:[%s143_s30 + $0x30] sm:$0xff]  ;;  %v182_v7 = vld [vmem:[%s143_s30 + $0x38] sm:$0xff]  ;;  %199 = vst [vmem:[%s161_s26] sm:$0xff] %v175_v0  ;;  %s704_s2 = int_to_ptr.vmem [resolvable:$true] %s223_s2 }
  0x43   : > { %s702_s5 = scalar_lea.hbm %s759_s1, %s329_s19  ;;  %200 = vst [vmem:[%s161_s26 + $0x8] sm:$0xff] %v176_v1  ;;  %201 = vst [vmem:[%s161_s26 + $0x10] sm:$0xff] %v177_v2  ;;  %s208_s9 = scalar_lea.sflag [#allocation4], %s689_s24 }
  0x44   : > { %202 = vst [vmem:[%s161_s26 + $0x18] sm:$0xff] %v178_v3  ;;  %203 = vst [vmem:[%s161_s26 + $0x20] sm:$0xff] %v179_v4  ;;  %s446_s10 = scalar_lea.vmem %s704_s2, 1024  ;;  %p766_p9 = scmp.ne.s32.totalorder %s763_s22, 0 }
  0x45   : > { %204 = vst [vmem:[%s161_s26 + $0x28] sm:$0xff] %v180_v5  ;;  %205 = vst [vmem:[%s161_s26 + $0x30] sm:$0xff] %v181_v6  ;;  %p447_p8 = scmp.ne.s32.totalorder %s704_s2, %s446_s10  ;;  %s550_s14 = smov [#allocation5]  }
  0x46   : > { %206 = vst [vmem:[%s161_s26 + $0x38] sm:$0xff] %v182_v7  ;;  %s450_s23 = sshll.u32 %s550_s14, 4  ;;  %s451_s23 = int_to_ptr.vmem [resolvable:$false] %s450_s23 }
  0x47   : > { %p448_p12 = pnand %p447_p8, %p766_p9  ;;  %s452_s20 = scalar_lea.vmem %s451_s23, 2048 }
  0x48   : > { %p453_p11 = scmp.lt.s32.totalorder %s704_s2, %s451_s23  ;;  %p454_p13 = scmp.lt.s32.totalorder %s452_s20, %s446_s10 }
  0x49   : > { %p449_p0 = pneg %p448_p12 }
  0x4a   : > { %p455_p1 = por %p454_p13, %p453_p11 }
  0x4c   : > { %p456_p4 = pnand %p455_p1, %p449_p0 }
  0x4e   : > { %459 = shalt.err (!%p456_p4)
}
  0x4f   : > { %s460_s28 = scalar_lea.hbm %s702_s5, 1024  ;;  %s464_s3 = scalar_lea.hbm %s759_s1, 4096 }
  0x50   : > { %p461_p3 = scmp.ne.s32.totalorder %s702_s5, %s460_s28  ;;  %p465_p2 = scmp.lt.u32.totalorder %s702_s5, %s759_s1 }
  0x51   : > { %p466_p5 = scmp.lt.u32.totalorder %s464_s3, %s460_s28  ;;  %p468_p8 = scmp.lt.u32.totalorder %s460_s28, %s702_s5 }
  0x52   : > { %p462_p6 = pnand %p461_p3, %p766_p9 }
  0x53   : > { %p467_p10 = por %p466_p5, %p465_p2 }
  0x54   : > { %p463_p7 = pneg %p462_p6 }
  0x55   : > { %p469_p12 = por %p468_p8, %p467_p10 }
  0x57   : > { %p470_p0 = pnand %p469_p12, %p463_p7 }
  0x59   : > { %473 = shalt.err (!%p470_p0)
}
  0x5a   : > { %s551_s19 = smov 128   ;;  %s552_s26 = smov 8  }
  0x5b   : > { %334 = dma.vmem_to_hbm [thread:$0]  (%p766_p9), %s704_s2, 1024, %s702_s5, %s208_s9, %s551_s19, %s551_s19, %s552_s26  }
  0x5c PF: > { %p345_p11 = scmp.ge.s32.totalorder %s544_s13, 2  ;;  %s238_s21 = sand.u32 1, %s516_s6  }
  0x5d   : > { %p767_p13 = scmp.ne.s32.totalorder %s764_s25, 0  ;;  %s239_s4 = scalar_lea.sflag [#allocation4], %s238_s21 }
  0x5f   : > { %p341_p1 = pnand %p345_p11, %p767_p13 }
  0x61   : > { %511 = dma.done.wait (!%p341_p1), %s239_s4, 1024  }
  0x62   : > { %513 = vsyncadd (!%p341_p1), %s239_s4, 4294966272  ;;  %s17_s13 = sadd.s32 1, %s544_s13   ;;  %s768_s6 = smov %s520_s7 }
  0x63   : > { %p14_p4 = scmp.ge.s32.totalorder %s17_s13, 6   ;;  %s769_s7 = smov %s524_s8 }
  0x64   : > { %s770_s8 = smov %s641_s27  ;;  %s771_s9 = smov %s536_s11 }
  0x65   : > { %s772_s10 = smov %s540_s12  ;;  %s773_s11 = smov %s776_s16 }
  0x66   : > { %s774_s12 = smov %s780_s17  ;;  %16 = sbr.rel (!%p14_p4) target bundleno = 7 (0x7), region = 73 }
  0x6d   :  { %244 = vsyncpa [#allocation3], 1 }
  0x6e   :  { %246 = vsyncpa [#allocation3 + $0x1], 1 }
  0x6f   :  { %247 = vsyncpa [#allocation4], 1 }
  0x70   :  { %249 = vsyncpa [#allocation4 + $0x1], 1 }

</bundles_post_ra>
